<compile_context>
chip_gen: v5e
topology: v5e:2x2
jax: 0.10.0
libtpu: 0.0.40
codegen_flags: <defaults>
</compile_context>

<pallas_src>
import math

import jax
import jax.numpy as jnp
from jax.experimental import pallas as pl
from jax.experimental.pallas import tpu as pltpu


def rnn_seq_kernel(cat_ref, inp_ref, hid0_ref,
                   w_cat_ref, w_inp_ref, w_hid_ref, b_io_ref,
                   w_o2o_h_ref, w_o2o_o_ref, b_o2o_ref,
                   out_ref, hidT_ref,
                   hid_sc, base_sc):
    t = pl.program_id(0)
    H = hid_sc.shape[1]

    # One-time init: load initial hidden state and precompute the timestep-invariant
    # part of the fused i2h|i2o projection (category contribution + bias).
    @pl.when(t == 0)
    def _():
        hid_sc[...] = hid0_ref[...]
        base_sc[...] = (
            jnp.dot(cat_ref[...], w_cat_ref[...], preferred_element_type=jnp.float32)
            + b_io_ref[...]
        )

    x = inp_ref[0]          # [B, I] input for this timestep
    h = hid_sc[...]         # [B, H] carried hidden state (VMEM resident)

    # Fused i2h|i2o projection: [B, H+O] = base + x @ W_inp + h @ W_hid
    io = (base_sc[...]
          + jnp.dot(x, w_inp_ref[...], preferred_element_type=jnp.float32)
          + jnp.dot(h, w_hid_ref[...], preferred_element_type=jnp.float32))

    hidden_new = io[:, :H]   # i2h output
    out_mid = io[:, H:]      # i2o output

    # o2o on cat([hidden_new, out_mid]) done as two split matmuls (no lane concat).
    out = (jnp.dot(hidden_new, w_o2o_h_ref[...], preferred_element_type=jnp.float32)
           + jnp.dot(out_mid, w_o2o_o_ref[...], preferred_element_type=jnp.float32)
           + b_o2o_ref[...])

    # dropout (eval) -> identity; numerically stable LogSoftmax over dim=1 in f32.
    m = jnp.max(out, axis=1, keepdims=True)
    z = out - m
    lse = jnp.log(jnp.sum(jnp.exp(z), axis=1, keepdims=True))
    out_ref[0] = z - lse

    # carry hidden state; final-hidden output block is resident across the grid.
    hid_sc[...] = hidden_new
    hidT_ref[...] = hidden_new


def rnn_forward_seq(category, inputs, hidden0, packed):
    """Run T teacher-forced steps of the RNN cell in one pallas_call.

    category: [B, nc]   (constant over time)
    inputs:   [T, B, I]
    hidden0:  [B, H]
    packed:   dict from pack_params() (weights already in [in, out] layout).
    Returns (log_probs [T, B, O], final_hidden [B, H]).
    """
    T, B, I = inputs.shape
    nc = category.shape[1]
    H = hidden0.shape[1]
    O = packed["w_o2o_o"].shape[1]
    HO = H + O

    in_specs = [
        pl.BlockSpec((B, nc), lambda t: (0, 0)),       # category
        pl.BlockSpec((1, B, I), lambda t: (t, 0, 0)),  # inputs (per-step block)
        pl.BlockSpec((B, H), lambda t: (0, 0)),        # hidden0
        pl.BlockSpec((nc, HO), lambda t: (0, 0)),      # w_cat_io   (resident)
        pl.BlockSpec((I, HO), lambda t: (0, 0)),       # w_inp_io   (resident)
        pl.BlockSpec((H, HO), lambda t: (0, 0)),       # w_hid_io   (resident)
        pl.BlockSpec((1, HO), lambda t: (0, 0)),       # b_io       (resident)
        pl.BlockSpec((H, O), lambda t: (0, 0)),        # w_o2o_h    (resident)
        pl.BlockSpec((O, O), lambda t: (0, 0)),        # w_o2o_o    (resident)
        pl.BlockSpec((1, O), lambda t: (0, 0)),        # b_o2o      (resident)
    ]
    out_specs = (
        pl.BlockSpec((1, B, O), lambda t: (t, 0, 0)),  # per-step log-probs slab
        pl.BlockSpec((B, H), lambda t: (0, 0)),        # final hidden (resident)
    )

    out, hidT = pl.pallas_call(
        rnn_seq_kernel,
        out_shape=(
            jax.ShapeDtypeStruct((T, B, O), jnp.float32),
            jax.ShapeDtypeStruct((B, H), jnp.float32),
        ),
        grid=(T,),
        in_specs=in_specs,
        out_specs=out_specs,
        scratch_shapes=[
            pltpu.VMEM((B, H), jnp.float32),    # carried hidden state
            pltpu.VMEM((B, HO), jnp.float32),   # category-proj + bias (precomputed)
        ],
        compiler_params=pltpu.CompilerParams(
            dimension_semantics=("arbitrary",),  # time is a true recurrence
        ),
    )(category, inputs, hidden0,
      packed["w_cat_io"], packed["w_inp_io"], packed["w_hid_io"], packed["b_io"],
      packed["w_o2o_h"], packed["w_o2o_o"], packed["b_o2o"])
    return out, hidT


def rnn_forward(category, inp, hidden, packed):
    """Single-step forward matching the PyTorch module's forward() exactly."""
    out, new_hidden = rnn_forward_seq(category, inp[None], hidden, packed)
    return out[0], new_hidden


def init_torch_params(key, n_categories, input_size, hidden_size, output_size):
    """PyTorch-style params: weights [out, in], biases [out], uniform(-1/sqrt(fan_in), ...)."""
    def linear(k, fan_in, fan_out):
        kw, kb = jax.random.split(k)
        bound = 1.0 / math.sqrt(fan_in)
        w = jax.random.uniform(kw, (fan_out, fan_in), jnp.float32, -bound, bound)
        b = jax.random.uniform(kb, (fan_out,), jnp.float32, -bound, bound)
        return w, b

    k1, k2, k3 = jax.random.split(key, 3)
    in_comb = n_categories + input_size + hidden_size
    w_i2h, b_i2h = linear(k1, in_comb, hidden_size)
    w_i2o, b_i2o = linear(k2, in_comb, output_size)
    w_o2o, b_o2o = linear(k3, hidden_size + output_size, output_size)
    return dict(w_i2h=w_i2h, b_i2h=b_i2h,
                w_i2o=w_i2o, b_i2o=b_i2o,
                w_o2o=w_o2o, b_o2o=b_o2o)


def pack_params(tp, n_categories, input_size, hidden_size, output_size):
    """One-time repack into kernel layout: [in, out] weights, split by input block,
    i2h|i2o fused along the output axis, biases as [1, out]."""
    nc, I, H, O = n_categories, input_size, hidden_size, output_size
    w_io = jnp.concatenate([tp["w_i2h"].T, tp["w_i2o"].T], axis=1)  # [nc+I+H, H+O]
    w_o2o_t = tp["w_o2o"].T                                         # [H+O, O]
    return dict(
        w_cat_io=w_io[:nc],
        w_inp_io=w_io[nc:nc + I],
        w_hid_io=w_io[nc + I:],
        b_io=jnp.concatenate([tp["b_i2h"], tp["b_i2o"]])[None, :],
        w_o2o_h=w_o2o_t[:H],
        w_o2o_o=w_o2o_t[H:],
        b_o2o=tp["b_o2o"][None, :],
    )


def ref_forward_seq(category, inputs, hidden0, tp):
    """Pure-JAX reference replicating the PyTorch forward per step (eval mode)."""
    outs = []
    h = hidden0
    for t in range(inputs.shape[0]):
        x = jnp.concatenate([category, inputs[t], h], axis=1)
        h = x @ tp["w_i2h"].T + tp["b_i2h"]
        o = x @ tp["w_i2o"].T + tp["b_i2o"]
        oc = jnp.concatenate([h, o], axis=1)
        o = oc @ tp["w_o2o"].T + tp["b_o2o"]
        outs.append(jax.nn.log_softmax(o, axis=1))
    return jnp.stack(outs), h


if __name__ == "__main__":
    n_categories = 8
    input_size = 16
    hidden_size = 32
    output_size = 16
    batch = 2
    T = 8

    key = jax.random.PRNGKey(0)
    kp, kc, ki = jax.random.split(key, 3)

    tp = init_torch_params(kp, n_categories, input_size, hidden_size, output_size)
    packed = pack_params(tp, n_categories, input_size, hidden_size, output_size)

    category = jax.random.normal(kc, (batch, n_categories), jnp.float32)
    inputs = jax.random.normal(ki, (T, batch, input_size), jnp.float32)
    hidden0 = jnp.zeros((batch, hidden_size), jnp.float32)  # initHidden()

    out, final_hidden = rnn_forward_seq(category, inputs, hidden0, packed)
    jax.block_until_ready((out, final_hidden))

    # correctness vs pure-JAX reference of the PyTorch forward
    ref_out, ref_hidden = ref_forward_seq(category, inputs, hidden0, tp)

    assert out.shape == (T, batch, output_size)
    assert final_hidden.shape == (batch, hidden_size)
    assert jnp.allclose(jnp.sum(jnp.exp(out), axis=-1), 1.0, atol=1e-5)
    assert jnp.allclose(out, ref_out, atol=1e-4, rtol=1e-4)
    assert jnp.allclose(final_hidden, ref_hidden, atol=1e-4, rtol=1e-4)

    print("KERNEL_OK")
</pallas_src>

<mosaic_0001>
module attributes {stable_mosaic.version = 11 : i64} {
  func.func @rnn_seq_kernel(%arg0: i32, %arg1: memref<2x8xf32, #tpu.memory_space<vmem>>, %arg2: memref<1x2x16xf32, #tpu.memory_space<vmem>>, %arg3: memref<2x32xf32, #tpu.memory_space<vmem>>, %arg4: memref<8x48xf32, #tpu.memory_space<vmem>>, %arg5: memref<16x48xf32, #tpu.memory_space<vmem>>, %arg6: memref<32x48xf32, #tpu.memory_space<vmem>>, %arg7: memref<1x48xf32, #tpu.memory_space<vmem>>, %arg8: memref<32x16xf32, #tpu.memory_space<vmem>>, %arg9: memref<16x16xf32, #tpu.memory_space<vmem>>, %arg10: memref<1x16xf32, #tpu.memory_space<vmem>>, %arg11: memref<1x2x16xf32, #tpu.memory_space<vmem>>, %arg12: memref<2x32xf32, #tpu.memory_space<vmem>>, %arg13: memref<2x32xf32, #tpu.memory_space<vmem>>, %arg14: memref<2x48xf32, #tpu.memory_space<vmem>>) attributes {dimension_semantics = [#tpu.dimension_semantics<arbitrary>], iteration_bounds = array<i64: 8>, scalar_prefetch = 0 : i64, scratch_operands = 2 : i64, tpu.core_type = #tpu.core_type<tc>, window_params = [{pipeline_mode = #tpu.pipeline_mode<synchronous>, transform_indices = @transform_0, window_bounds = array<i64: 2, 8>}, {transform_indices = @transform_1, window_bounds = array<i64: 1, 2, 16>}, {pipeline_mode = #tpu.pipeline_mode<synchronous>, transform_indices = @transform_2, window_bounds = array<i64: 2, 32>}, {pipeline_mode = #tpu.pipeline_mode<synchronous>, transform_indices = @transform_3, window_bounds = array<i64: 8, 48>}, {pipeline_mode = #tpu.pipeline_mode<synchronous>, transform_indices = @transform_4, window_bounds = array<i64: 16, 48>}, {pipeline_mode = #tpu.pipeline_mode<synchronous>, transform_indices = @transform_5, window_bounds = array<i64: 32, 48>}, {pipeline_mode = #tpu.pipeline_mode<synchronous>, transform_indices = @transform_6, window_bounds = array<i64: 1, 48>}, {pipeline_mode = #tpu.pipeline_mode<synchronous>, transform_indices = @transform_7, window_bounds = array<i64: 32, 16>}, {pipeline_mode = #tpu.pipeline_mode<synchronous>, transform_indices = @transform_8, window_bounds = array<i64: 16, 16>}, {pipeline_mode = #tpu.pipeline_mode<synchronous>, transform_indices = @transform_9, window_bounds = array<i64: 1, 16>}, {transform_indices = @transform_10, window_bounds = array<i64: 1, 2, 16>}, {pipeline_mode = #tpu.pipeline_mode<synchronous>, transform_indices = @transform_11, window_bounds = array<i64: 2, 32>}]} {
    %c0_i32 = arith.constant 0 : i32
    %0 = arith.cmpi eq, %arg0, %c0_i32 : i32
    %1 = arith.extui %0 : i1 to i32
    %c0_i32_0 = arith.constant 0 : i32
    %2 = arith.cmpi ne, %1, %c0_i32_0 : i32
    scf.if %2 {
      %c0_29 = arith.constant 0 : index
      %c0_30 = arith.constant 0 : index
      %38 = vector.load %arg3[%c0_29, %c0_30] : memref<2x32xf32, #tpu.memory_space<vmem>>, vector<2x32xf32>
      %c0_31 = arith.constant 0 : index
      %c0_32 = arith.constant 0 : index
      %39 = vector.load %arg13[%c0_31, %c0_32] : memref<2x32xf32, #tpu.memory_space<vmem>>, vector<2x32xf32>
      tpu.vector_store %arg13[%c0_31, %c0_32], %38 {strides = array<i32>} : memref<2x32xf32, #tpu.memory_space<vmem>>, vector<2x32xf32>,
      %c0_33 = arith.constant 0 : index
      %c0_34 = arith.constant 0 : index
      %40 = vector.load %arg1[%c0_33, %c0_34] : memref<2x8xf32, #tpu.memory_space<vmem>>, vector<2x8xf32>
      %c0_35 = arith.constant 0 : index
      %c0_36 = arith.constant 0 : index
      %41 = vector.load %arg4[%c0_35, %c0_36] : memref<8x48xf32, #tpu.memory_space<vmem>>, vector<8x48xf32>
      %cst_37 = arith.constant dense<0.000000e+00> : vector<2x48xf32>
      %42 = tpu.matmul %40, %41, %cst_37 {dimension_numbers = #tpu.dot_dimension_numbers<[1], [0], [0], [1], [0, 0, 1, 1], [], []>} : vector<2x8xf32>, vector<8x48xf32>, vector<2x48xf32> -> vector<2x48xf32>
      %c0_38 = arith.constant 0 : index
      %c0_39 = arith.constant 0 : index
      %43 = vector.load %arg7[%c0_38, %c0_39] : memref<1x48xf32, #tpu.memory_space<vmem>>, vector<1x48xf32>
      %44 = vector.broadcast %43 : vector<1x48xf32> to vector<2x48xf32>
      %45 = arith.addf %42, %44 : vector<2x48xf32>
      %c0_40 = arith.constant 0 : index
      %c0_41 = arith.constant 0 : index
      %46 = vector.load %arg14[%c0_40, %c0_41] : memref<2x48xf32, #tpu.memory_space<vmem>>, vector<2x48xf32>
      tpu.vector_store %arg14[%c0_40, %c0_41], %45 {strides = array<i32>} : memref<2x48xf32, #tpu.memory_space<vmem>>, vector<2x48xf32>,
    } else {
    }
    %c0 = arith.constant 0 : index
    %c0_1 = arith.constant 0 : index
    %c0_2 = arith.constant 0 : index
    %3 = vector.load %arg2[%c0, %c0_1, %c0_2] : memref<1x2x16xf32, #tpu.memory_space<vmem>>, vector<1x2x16xf32>
    %4 = vector.shape_cast %3 : vector<1x2x16xf32> to vector<2x16xf32>
    %c0_3 = arith.constant 0 : index
    %c0_4 = arith.constant 0 : index
    %5 = vector.load %arg13[%c0_3, %c0_4] : memref<2x32xf32, #tpu.memory_space<vmem>>, vector<2x32xf32>
    %c0_5 = arith.constant 0 : index
    %c0_6 = arith.constant 0 : index
    %6 = vector.load %arg14[%c0_5, %c0_6] : memref<2x48xf32, #tpu.memory_space<vmem>>, vector<2x48xf32>
    %c0_7 = arith.constant 0 : index
    %c0_8 = arith.constant 0 : index
    %7 = vector.load %arg5[%c0_7, %c0_8] : memref<16x48xf32, #tpu.memory_space<vmem>>, vector<16x48xf32>
    %cst = arith.constant dense<0.000000e+00> : vector<2x48xf32>
    %8 = tpu.matmul %4, %7, %cst {dimension_numbers = #tpu.dot_dimension_numbers<[1], [0], [0], [1], [0, 0, 1, 1], [], []>} : vector<2x16xf32>, vector<16x48xf32>, vector<2x48xf32> -> vector<2x48xf32>
    %9 = arith.addf %6, %8 : vector<2x48xf32>
    %c0_9 = arith.constant 0 : index
    %c0_10 = arith.constant 0 : index
    %10 = vector.load %arg6[%c0_9, %c0_10] : memref<32x48xf32, #tpu.memory_space<vmem>>, vector<32x48xf32>
    %cst_11 = arith.constant dense<0.000000e+00> : vector<2x48xf32>
    %11 = tpu.matmul %5, %10, %cst_11 {dimension_numbers = #tpu.dot_dimension_numbers<[1], [0], [0], [1], [0, 0, 1, 1], [], []>} : vector<2x32xf32>, vector<32x48xf32>, vector<2x48xf32> -> vector<2x48xf32>
    %12 = arith.addf %9, %11 : vector<2x48xf32>
    %13 = vector.extract_strided_slice %12 {offsets = [0, 0], sizes = [2, 32], strides = [1, 1]} : vector<2x48xf32> to vector<2x32xf32>
    %14 = vector.extract_strided_slice %12 {offsets = [0, 32], sizes = [2, 16], strides = [1, 1]} : vector<2x48xf32> to vector<2x16xf32>
    %c0_12 = arith.constant 0 : index
    %c0_13 = arith.constant 0 : index
    %15 = vector.load %arg8[%c0_12, %c0_13] : memref<32x16xf32, #tpu.memory_space<vmem>>, vector<32x16xf32>
    %cst_14 = arith.constant dense<0.000000e+00> : vector<2x16xf32>
    %16 = tpu.matmul %13, %15, %cst_14 {dimension_numbers = #tpu.dot_dimension_numbers<[1], [0], [0], [1], [0, 0, 1, 1], [], []>} : vector<2x32xf32>, vector<32x16xf32>, vector<2x16xf32> -> vector<2x16xf32>
    %c0_15 = arith.constant 0 : index
    %c0_16 = arith.constant 0 : index
    %17 = vector.load %arg9[%c0_15, %c0_16] : memref<16x16xf32, #tpu.memory_space<vmem>>, vector<16x16xf32>
    %cst_17 = arith.constant dense<0.000000e+00> : vector<2x16xf32>
    %18 = tpu.matmul %14, %17, %cst_17 {dimension_numbers = #tpu.dot_dimension_numbers<[1], [0], [0], [1], [0, 0, 1, 1], [], []>} : vector<2x16xf32>, vector<16x16xf32>, vector<2x16xf32> -> vector<2x16xf32>
    %19 = arith.addf %16, %18 : vector<2x16xf32>
    %c0_18 = arith.constant 0 : index
    %c0_19 = arith.constant 0 : index
    %20 = vector.load %arg10[%c0_18, %c0_19] : memref<1x16xf32, #tpu.memory_space<vmem>>, vector<1x16xf32>
    %21 = vector.broadcast %20 : vector<1x16xf32> to vector<2x16xf32>
    %22 = arith.addf %19, %21 : vector<2x16xf32>
    %cst_20 = arith.constant dense<0xFF800000> : vector<2xf32>
    %23 = vector.multi_reduction <maximumf>, %22, %cst_20 [1] : vector<2x16xf32> to vector<2xf32>
    %24 = vector.shape_cast %23 : vector<2xf32> to vector<2x1xf32>
    %25 = vector.broadcast %24 : vector<2x1xf32> to vector<2x16xf32>
    %26 = arith.subf %22, %25 : vector<2x16xf32>
    %27 = math.exp %26 : vector<2x16xf32>
    %cst_21 = arith.constant dense<0.000000e+00> : vector<2xf32>
    %28 = vector.multi_reduction <add>, %27, %cst_21 [1] : vector<2x16xf32> to vector<2xf32>
    %29 = vector.shape_cast %28 : vector<2xf32> to vector<2x1xf32>
    %30 = math.log %29 : vector<2x1xf32>
    %31 = vector.broadcast %30 : vector<2x1xf32> to vector<2x16xf32>
    %32 = arith.subf %26, %31 : vector<2x16xf32>
    %c0_22 = arith.constant 0 : index
    %c0_23 = arith.constant 0 : index
    %c0_24 = arith.constant 0 : index
    %33 = vector.load %arg11[%c0_22, %c0_23, %c0_24] : memref<1x2x16xf32, #tpu.memory_space<vmem>>, vector<1x2x16xf32>
    %34 = vector.shape_cast %33 : vector<1x2x16xf32> to vector<2x16xf32>
    %35 = vector.shape_cast %32 : vector<2x16xf32> to vector<1x2x16xf32>
    tpu.vector_store %arg11[%c0_22, %c0_23, %c0_24], %35 {strides = array<i32>} : memref<1x2x16xf32, #tpu.memory_space<vmem>>, vector<1x2x16xf32>,
    %c0_25 = arith.constant 0 : index
    %c0_26 = arith.constant 0 : index
    %36 = vector.load %arg13[%c0_25, %c0_26] : memref<2x32xf32, #tpu.memory_space<vmem>>, vector<2x32xf32>
    tpu.vector_store %arg13[%c0_25, %c0_26], %13 {strides = array<i32>} : memref<2x32xf32, #tpu.memory_space<vmem>>, vector<2x32xf32>,
    %c0_27 = arith.constant 0 : index
    %c0_28 = arith.constant 0 : index
    %37 = vector.load %arg12[%c0_27, %c0_28] : memref<2x32xf32, #tpu.memory_space<vmem>>, vector<2x32xf32>
    tpu.vector_store %arg12[%c0_27, %c0_28], %13 {strides = array<i32>} : memref<2x32xf32, #tpu.memory_space<vmem>>, vector<2x32xf32>,
    return
  }
  func.func @transform_0(%arg0: i32) -> (i32, i32) {
    %c0_i32 = arith.constant 0 : i32
    %c0_i32_0 = arith.constant 0 : i32
    %c0_i32_1 = arith.constant 0 : i32
    return %c0_i32, %c0_i32_0 : i32, i32
  }
  func.func @transform_1(%arg0: i32) -> (i32, i32, i32) {
    %c0_i32 = arith.constant 0 : i32
    %c0_i32_0 = arith.constant 0 : i32
    %c0_i32_1 = arith.constant 0 : i32
    return %arg0, %c0_i32, %c0_i32_0 : i32, i32, i32
  }
  func.func @transform_2(%arg0: i32) -> (i32, i32) {
    %c0_i32 = arith.constant 0 : i32
    %c0_i32_0 = arith.constant 0 : i32
    %c0_i32_1 = arith.constant 0 : i32
    return %c0_i32, %c0_i32_0 : i32, i32
  }
  func.func @transform_3(%arg0: i32) -> (i32, i32) {
    %c0_i32 = arith.constant 0 : i32
    %c0_i32_0 = arith.constant 0 : i32
    %c0_i32_1 = arith.constant 0 : i32
    return %c0_i32, %c0_i32_0 : i32, i32
  }
  func.func @transform_4(%arg0: i32) -> (i32, i32) {
    %c0_i32 = arith.constant 0 : i32
    %c0_i32_0 = arith.constant 0 : i32
    %c0_i32_1 = arith.constant 0 : i32
    return %c0_i32, %c0_i32_0 : i32, i32
  }
  func.func @transform_5(%arg0: i32) -> (i32, i32) {
    %c0_i32 = arith.constant 0 : i32
    %c0_i32_0 = arith.constant 0 : i32
    %c0_i32_1 = arith.constant 0 : i32
    return %c0_i32, %c0_i32_0 : i32, i32
  }
  func.func @transform_6(%arg0: i32) -> (i32, i32) {
    %c0_i32 = arith.constant 0 : i32
    %c0_i32_0 = arith.constant 0 : i32
    %c0_i32_1 = arith.constant 0 : i32
    return %c0_i32, %c0_i32_0 : i32, i32
  }
  func.func @transform_7(%arg0: i32) -> (i32, i32) {
    %c0_i32 = arith.constant 0 : i32
    %c0_i32_0 = arith.constant 0 : i32
    %c0_i32_1 = arith.constant 0 : i32
    return %c0_i32, %c0_i32_0 : i32, i32
  }
  func.func @transform_8(%arg0: i32) -> (i32, i32) {
    %c0_i32 = arith.constant 0 : i32
    %c0_i32_0 = arith.constant 0 : i32
    %c0_i32_1 = arith.constant 0 : i32
    return %c0_i32, %c0_i32_0 : i32, i32
  }
  func.func @transform_9(%arg0: i32) -> (i32, i32) {
    %c0_i32 = arith.constant 0 : i32
    %c0_i32_0 = arith.constant 0 : i32
    %c0_i32_1 = arith.constant 0 : i32
    return %c0_i32, %c0_i32_0 : i32, i32
  }
  func.func @transform_10(%arg0: i32) -> (i32, i32, i32) {
    %c0_i32 = arith.constant 0 : i32
    %c0_i32_0 = arith.constant 0 : i32
    %c0_i32_1 = arith.constant 0 : i32
    return %arg0, %c0_i32, %c0_i32_0 : i32, i32, i32
  }
  func.func @transform_11(%arg0: i32) -> (i32, i32) {
    %c0_i32 = arith.constant 0 : i32
    %c0_i32_0 = arith.constant 0 : i32
    %c0_i32_1 = arith.constant 0 : i32
    return %c0_i32, %c0_i32_0 : i32, i32
  }
}

</mosaic_0001>

<bundles_post_ra>
// kernel: tpu_custom_call.1
= control target key start
LH: loop header
LB: loop body
LE: loop exit
PB: predicated region body
PF: predicated region fallthrough
CT: control target
= control target key end

     0   :  { %s1294_s0 = inlined_call_operand.vmem [shape: f32[2,8], index: 0, kind: input, shape index: {}]   ;;  %s1295_s1 = inlined_call_operand.vmem [shape: f32[8,2,16], index: 1, kind: input, shape index: {}]   ;;  %s1296_s2 = inlined_call_operand.vmem [shape: f32[2,32], index: 2, kind: input, shape index: {}]   ;;  %s1297_s3 = inlined_call_operand.hbm [shape: f32[8,48], index: 3, kind: input, shape index: {}]   ;;  %s1298_s4 = inlined_call_operand.hbm [shape: f32[16,48], index: 4, kind: input, shape index: {}]   ;;  %s1299_s5 = inlined_call_operand.vmem [shape: f32[32,48], index: 5, kind: input, shape index: {}]   ;;  %s1300_s6 = inlined_call_operand.vmem [shape: f32[1,48], index: 6, kind: input, shape index: {}]   ;;  %s1301_s7 = inlined_call_operand.vmem [shape: f32[32,16], index: 7, kind: input, shape index: {}]   ;;  %s1302_s8 = inlined_call_operand.hbm [shape: f32[16,16], index: 8, kind: input, shape index: {}]   ;;  %s1303_s9 = inlined_call_operand.vmem [shape: f32[1,16], index: 9, kind: input, shape index: {}]   ;;  %s1304_s10 = inlined_call_operand.hbm [shape: f32[8,2,16], index: 10, kind: output, shape index: {0}]   ;;  %s1305_s11 = inlined_call_operand.hbm [shape: f32[2,32], index: 11, kind: output, shape index: {1}]  }
   0x1   :  { %1309 = sst [smem:[#allocation20_spill]] %s1298_s4 }
   0x2   :  { %17 = vsyncpa [#allocation5], 0 }
   0x3   :  { %18 = vsyncpa [#allocation8], 0 }
   0x4   :  { %19 = vsyncpa [#allocation6], 0 }
   0x5   :  { %21 = vsyncpa [#allocation6 + $0x1], 0 }
   0x6   :  { %22 = vsyncpa [#allocation12], 0  ;;  %s1103_s17 = smov 0   ;;  %s1105_s18 = smov 0  }
   0x7   :  { %s1107_s19 = smov 0   ;;  %s1109_s20 = smov 0  }
   0x8 LB: > { %1310 = sst [smem:[#allocation17_spill]] %s1030_s19  ;;  %s1124_s21 = sadd.s32 4294967295, %s1034_s20   ;;  %s1034_s20 = sphi %s1109_s20, %s1318_s20   ;;  %s1030_s19 = sphi %s1107_s19, %s1320_s19   ;;  %s1026_s18 = sphi %s1105_s18, %s1322_s18   ;;  %s1022_s17 = sphi %s1103_s17, %s1321_s17  }
   0x9   : > { %s732_s22 = sadd.s32 4294967294, %s1034_s20   ;;  %s1128_s23 = sadd.s32 1, %s1034_s20  }
   0xa   : > { %1311 = sst [smem:[#allocation18_spill]] %s1128_s23  ;;  %s250_s24 = sadd.s32 1, %s1030_s19 }
   0xb   : > { %s247_s25 = ssub.s32 %s1034_s20, %s1128_s23  ;;  %p260_p0 = scmp.ne.s32.totalorder %s1030_s19, %s1026_s18 }
   0xc   : > { %p248_p1 = scmp.eq.s32.totalorder %s247_s25, 0  ;;  %p261_p2 = scmp.eq.s32.totalorder %s1124_s21, 7 }
   0xd   : > { %p266_p3 = scmp.ne.s32.totalorder %s1026_s18, %s1022_s17  ;;  %p267_p4 = scmp.eq.s32.totalorder %s732_s22, 7 }
   0xe   : > { %s1139_s26 = scalar_select %p248_p1, %s1030_s19, %s250_s24  }
   0xf   : > { %p1143_p5 = por %p261_p2, %p260_p0  ;;  %p1147_p6 = por %p267_p4, %p266_p3 }
  0x10   : > { %1312 = sst [smem:[#allocation19_spill]] %s1139_s26  ;;  %p733_p7 = scmp.ge.s32.totalorder %s1034_s20, 1 }
  0x11   : > { %p295_p8 = scmp.lt.s32.totalorder %s1034_s20, 9  ;;  %p734_p9 = scmp.ne.s32.totalorder %s1124_s21, 0 }
  0x12   : > { %p788_p10 = scmp.eq.s32.totalorder %s1124_s21, 0  ;;  %s1316_s4 = sld [smem:[#allocation20_spill]] }
  0x13   : > { %p1155_p11 = pnand %p733_p7, %p295_p8  ;;  %s1036_s14 = smov [#allocation7]  }
  0x14   : > { %s326_s15 = sshll.u32 %s1036_s14, 4  ;;  %s313_s25 = sshll.u32 %s1297_s3, 4  ;;  %s327_s15 = int_to_ptr.vmem [resolvable:$true] %s326_s15  ;;  %s314_s25 = int_to_ptr.hbm [resolvable:$true] %s313_s25 }
  0x15   : > { %p774_p12 = pneg %p1155_p11  ;;  %s1037_s30 = smov 128  }
  0x16   : > { %s1038_s12 = smov 8   ;;  %s347_s23 = sshll.u32 %s1302_s8, 4  ;;  %s348_s23 = int_to_ptr.hbm [resolvable:$true] %s347_s23 }
  0x17   : > { %p1166_p13 = pnand %p788_p10, %p774_p12  ;;  %s1040_s22 = smov [#allocation9]  }
  0x18   : > { %s324_s13 = sshll.u32 %s1316_s4, 4  ;;  %s1039_s4 = smov [#allocation4]   ;;  %s325_s13 = int_to_ptr.hbm [resolvable:$true] %s324_s13 }
  0x19   : > { %780 = dma.hbm_to_vmem [thread:$0]  (!%p1166_p13), %s325_s13, 256, %s327_s15, [#allocation8], %s1037_s30, %s1037_s30, %s1038_s12  }
  0x1a   : > { %s315_s14 = sshll.u32 %s1039_s4, 4  ;;  %s349_s24 = sshll.u32 %s1040_s22, 4  ;;  %s316_s14 = int_to_ptr.vmem [resolvable:$true] %s315_s14  ;;  %s350_s24 = int_to_ptr.vmem [resolvable:$true] %s349_s24 }
  0x1b   : > { %777 = dma.hbm_to_vmem [thread:$0]  (!%p1166_p13), %s314_s25, 128, %s316_s14, [#allocation5]  }
  0x1c   : > { %783 = dma.hbm_to_vmem [thread:$0]  (!%p1166_p13), %s348_s23, 256, %s350_s24, [#allocation8], %s1037_s30, %s1037_s30, %s1038_s12  }
  0x1d   : > { %375 = sbr.rel (%p1155_p11) target bundleno = 822 (0x336), region = 60 }
  0x22   : > { %1005 = dma.done.wait (%p788_p10), [#allocation5], 128  }
  0x23   : > { %1007 = vsyncadd (%p788_p10), [#allocation5], 4294967168 }
  0x24   : > { %1009 = dma.done.wait (%p788_p10), [#allocation8], 512  }
  0x25   : > { %1011 = vsyncadd (%p788_p10), [#allocation8], 4294966784  ;;  %s420_s4 = sand.u32 1, %s1026_s18   ;;  %p425_p0 = scmp.lt.s32.totalorder %s1124_s21, 7 }
  0x26   : > { %s1196_s19 = sshll.u32 %s420_s4, 1  ;;  %432 = sbr.rel (%p734_p9) target bundleno = 174 (0xae), region = 76 }
  0x27   : > { %s426_s23 = scalar_select %p425_p0, %s1124_s21, 7 }
  0x28   : > { %s422_s16 = scalar_lea.vmem [#allocation10], %s1196_s19 }
  0x29   : > { %s743_s26 = sshll.u32 %s426_s23, 1 }
  0x2a   : > { %s428_s15 = scalar_lea.vmem %s1295_s1, %s743_s26 }
  0x2b   : > { %v433_v0 = vld [vmem:[%s1296_s2] sm:$0x3]  ;;  %vm434_vm0 = vcmask 254976   ;;  %v437_v1 = vld [vmem:[#allocation4] sm:$0xff]  ;;  %vm442_vm1 = vcmask 64512   ;;  %vm466_vm2 = vcmask 386048  }
  0x2c   : > { %v436_v2 = vld [vmem:[%s1294_s0] sm:$0x3]  ;;  %435 = vst.msk [vmem:[#allocation2] sm:$0x3] %vm434_vm0, %v433_v0  ;;  %461 = vmatpush.msra.mxu0 %v437_v1 }
  0x2d   : > { %745 = vmatmul.msk.f32.vlgmr.msra.gmra.mxu0 %vm442_vm1, %v436_v2  ;;  %v836_v3 = vld [vmem:[%s1300_s6] ss:$0 sm:$0xff] }
  0xaa   : > { %v463_v4 = vpop.f32.mrf.mxu0 }
  0xab   : > { %v464_v5 = vadd.f32 %v836_v3, %v463_v4 }
  0xad   : > { %467 = vst.msk [vmem:[#allocation3] sm:$0x3] %vm466_vm2, %v464_v5 }
  0xae PF: > { %v501_v6 = vld [vmem:[%s1299_s5 + $0x18] sm:$0xff]  ;;  %v500_v8 = vld [vmem:[%s1299_s5 + $0x10] sm:$0xff]  ;;  %v468_v10 = vld [vmem:[%s428_s15] sm:$0x3]  ;;  %vm473_vm3 = vcmask 130048   ;;  %vm502_vm4 = vcmask 261120  }
  0xaf   : > { %v472_v7 = vld [vmem:[#allocation7 + $0x8] sm:$0xff]  ;;  %518 = vmatpush.msra.mxu1 %v501_v6  ;;  %v471_v9 = vld [vmem:[#allocation7] sm:$0xff]  ;;  %v498_v13 = vld [vmem:[%s1299_s5] sm:$0xff]  ;;  %vm599_vm5 = vcmask 254976   ;;  %s1041_s30 = smov 96   ;;  %vm585_vm6 = vcmask 123904  }
  0xb0   : > { %491 = vmatpush.msra.mxu0 %v472_v7  ;;  %v499_v11 = vld [vmem:[%s1299_s5 + $0x8] sm:$0xff]  ;;  %v530_v12 = vld [vmem:[%s1301_s7 + $0x18] sm:$0xff]  ;;  %v469_v14 = vld [vmem:[#allocation2] sm:$0x3]  ;;  %s1042_s22 = smov [#allocation11]   ;;  %s629_s26 = sshll.u32 %s1305_s11, 4  ;;  %s630_s26 = int_to_ptr.hbm [resolvable:$true] %s629_s26 }
  0xb1   : > { %519 = vmatpush.msra.mxu1 %v500_v8  ;;  %572 = vmatpush.msra.mxu3 %v530_v12  ;;  %v529_v15 = vld [vmem:[%s1301_s7 + $0x10] sm:$0xff]  ;;  %v528_v16 = vld [vmem:[%s1301_s7 + $0x8] sm:$0xff]  ;;  %v527_v17 = vld [vmem:[%s1301_s7] sm:$0xff]  ;;  %s627_s24 = sshll.u32 %s1042_s22, 4  ;;  %s751_s29 = sshll.u32 %s1124_s21, 1  ;;  %s628_s24 = int_to_ptr.vmem [resolvable:$true] %s627_s24 }
  0xb2   : > { %492 = vmatpush.msra.mxu0 %v471_v9  ;;  %v532_v18 = vld [vmem:[#allocation9 + $0x8] sm:$0xff]  ;;  %v531_v19 = vld [vmem:[#allocation9] sm:$0xff]  ;;  %s615_s12 = sshll.u32 %s422_s16, 4  ;;  %s603_s22 = scalar_lea.sflag [#allocation6], %s420_s4  ;;  %s616_s12 = int_to_ptr.vmem [resolvable:$true] %s615_s12 }
  0xb3   : > { %746 = vmatmul.msk.f32.vlgmr.msra.gmra.mxu0 %vm473_vm3, %v468_v10  ;;  %520 = vmatpush.msra.mxu1 %v499_v11  ;;  %v837_v26 = vld [vmem:[%s1303_s9] ss:$0 sm:$0xff] }
  0xb4   : > { %573 = vmatpush.msra.mxu3 %v529_v15  ;;  %552 = vmatpush.msra.mxu2 %v532_v18  ;;  %v470_v20 = vld [vmem:[#allocation3] sm:$0x3] }
  0xb5   : > { %521 = vmatpush.msra.mxu1 %v498_v13 }
  0xb6   : > { %747 = vmatmul.msk.f32.vlgmr.msra.gmra.mxu1 %vm502_vm4, %v469_v14  ;;  %574 = vmatpush.msra.mxu3 %v528_v16 }
  0xb7   : > { %553 = vmatpush.msra.mxu2 %v531_v19 }
  0xb8   : > { %575 = vmatpush.msra.mxu3 %v527_v17 }
 0x130   : > { %v494_v21 = vpop.f32.mrf.mxu0 }
 0x131   : > { %v497_v22 = vadd.f32 %v494_v21, %v470_v20 }
 0x133   : > { %v523_v23 = vpop.f32.mrf.mxu1 }
 0x134   : > { %v526_v24 = vadd.f32 %v523_v23, %v497_v22 }
 0x136   : > { %534 = vrot.lane.b32.xlu0 %v526_v24, %s1041_s30  ;;  %749 = vmatmul.msk.f32.vlgmr.msra.gmra.mxu3 %vm502_vm4, %v526_v24  ;;  %600 = vst.msk [vmem:[#allocation2] sm:$0x3] %vm599_vm5, %v526_v24  ;;  %s613_s30 = scalar_lea.hbm %s1304_s10, %s751_s29  ;;  %s980_s29 = scalar_lea.hbm %s1304_s10, 16 }
 0x137   : > { %601 = vst.msk [vmem:[#allocation11] sm:$0x3] %vm599_vm5, %v526_v24  ;;  %s617_s14 = sshll.u32 %s613_s30, 4  ;;  %s618_s14 = int_to_ptr.hbm [resolvable:$true] %s617_s14 }
 0x138   : > { %770 = dma.vmem_to_hbm [thread:$0]  (%p261_p2), %s628_s24, 32, %s630_s26, [#allocation12]  }
 0x139   : > { %s974_s24 = sshra.s32 %s618_s14, 4  ;;  %s975_s24 = int_to_ptr.hbm [resolvable:$true] %s974_s24 }
 0x13a   : > { %s976_s15 = scalar_lea.hbm %s975_s24, 2  ;;  %p981_p7 = scmp.lt.s32.totalorder %s975_s24, %s1304_s10 }
 0x13b   : > { %p977_p1 = scmp.ne.s32.totalorder %s975_s24, %s976_s15  ;;  %p982_p8 = scmp.lt.s32.totalorder %s980_s29, %s976_s15 }
 0x13d   : > { %p978_p3 = pnand %p977_p1, %p1143_p5  ;;  %p983_p9 = por %p982_p8, %p981_p7 }
 0x13f   : > { %p979_p4 = pneg %p978_p3 }
 0x141   : > { %p984_p10 = pnand %p983_p9, %p979_p4 }
 0x1a8   : > { %v535_v25 = vpop.permute.xlu0 %534 }
 0x1a9   : > { %748 = vmatmul.msk.f32.vlgmr.msra.gmra.mxu2 %vm473_vm3, %v535_v25 }
 0x1b9   : > { %v577_v27 = vpop.f32.mrf.mxu3 }
 0x22c   : > { %v555_v28 = vpop.f32.mrf.mxu2 }
 0x22d   : > { %v578_v29 = vadd.f32 %v577_v27, %v555_v28 }
 0x22f   : > { %v584_v30 = vadd.f32 %v837_v26, %v578_v29 }
 0x231   : > { %v586_v31 = vsel %vm585_vm6, %v584_v30, -inf }
 0x232   : > { %587 = vmax.xlane.f32.xlu0 %v586_v31 }
 0x2a5   : > { %v588_v32 = vpop.xlane.xlu0 %587 }
 0x2a6   : > { %v589_v33 = vsub.f32 %v584_v30, %v588_v32 }
 0x2a8   : > { %v590_v34 = vmul.f32 1.442695, %v589_v33 }
 0x2aa   : > { %838 = vpow2.f32 %v590_v34 }
 0x2b0   : > { %v839_v35 = vpop.eup %838 }
 0x2b1   : > { %v592_v36 = vsel %vm585_vm6, %v839_v35, 0.0 }
 0x2b2   : > { %593 = vadd.xlane.f32.xlu1 %v592_v36 }
 0x325   : > { %v594_v37 = vpop.xlane.xlu1 %593 }
 0x326   : > { %840 = vlog2.f32 %v594_v37 }
 0x32c   : > { %v841_v38 = vpop.eup %840 }
 0x32d   : > { %v596_v39 = vmul.f32 0.6931472, %v841_v38 }
 0x32f   : > { %v597_v40 = vsub.f32 %v589_v33, %v596_v39 }
 0x331   : > { %598 = vst.msk [vmem:[%s422_s16] sm:$0x3] %vm585_vm6, %v597_v40 }
 0x332   : > { %987 = shalt.err (!%p984_p10)
}
 0x333   : > { %768 = dma.vmem_to_hbm [thread:$0]  (%p1143_p5), %s616_s12, 32, %s618_s14, %s603_s22  }
 0x334   : > { %1013 = dma.done.wait (%p261_p2), [#allocation12], 32  }
 0x335   : > { %1015 = vsyncadd (%p261_p2), [#allocation12], 4294967264 }
 0x336 PF: > { %p796_p11 = scmp.ge.s32.totalorder %s1034_s20, 2  ;;  %s646_s4 = sand.u32 1, %s1022_s17  }
 0x337   : > { %s647_s19 = scalar_lea.sflag [#allocation6], %s646_s4 }
 0x338   : > { %p785_p12 = pnand %p796_p11, %p1147_p6 }
 0x33a   : > { %p786_p13 = pneg %p785_p12 }
 0x33c   : > { %1017 = dma.done.wait (%p786_p13), %s647_s19, 32  }
 0x33d   : > { %1019 = vsyncadd (%p786_p13), %s647_s19, 4294967264  ;;  %s1318_s20 = sld [smem:[#allocation18_spill]]  ;;  %s1321_s17 = smov %s1026_s18 }
 0x33e   : > { %s1319_s27 = sld [smem:[#allocation17_spill]] }
 0x33f   : > { %s1320_s19 = sld [smem:[#allocation19_spill]] }
 0x343   : > { %p25_p5 = scmp.ge.s32.totalorder %s1318_s20, 10  }
 0x344   : > { %s1322_s18 = smov %s1319_s27 }
 0x345   :  { %27 = sbr.rel (!%p25_p5) target bundleno = 8 (0x8), region = 120 }
 0x34a   :  { %653 = vsyncpa [#allocation5], 1 }
 0x34b   :  { %655 = vsyncpa [#allocation5 + $0x1], 1 }
 0x34c   :  { %656 = vsyncpa [#allocation8], 1 }
 0x34d   :  { %657 = vsyncpa [#allocation6], 1 }
 0x34e   :  { %659 = vsyncpa [#allocation6 + $0x1], 1 }
 0x34f   :  { %660 = vsyncpa [#allocation12], 1 }

</bundles_post_ra>
